<compile_context>
chip_gen: v6e
topology: v6e:2x2x1
jax: 0.10.0
libtpu: 0.0.40
codegen_flags: <defaults>
</compile_context>

<pallas_src>
import functools

import jax
import jax.numpy as jnp
from jax.experimental import pallas as pl
from jax.experimental.pallas import tpu as pltpu


# Set to jnp.bfloat16 on v6e/v7x for higher MXU throughput / half the VMEM and
# HBM traffic on the matmul operands at larger H.  The hidden-state carry and
# all sigmoid/tanh/elementwise math stay in f32 either way.
MATMUL_DTYPE = jnp.float32


# ----------------------------------------------------------------------------
# Kernel 1: fused GRU recurrence.
#   Grid iterates sequentially over time *blocks* ("arbitrary").
#   Per block:  one fused input-projection matmul (T_BLOCK*B, D) @ (D, 3H),
#   then T_BLOCK statically-unrolled recurrence steps using a fused (H, 2H)
#   z/r matmul and an (H, H) candidate matmul.  ht lives in VMEM scratch.
# ----------------------------------------------------------------------------
def gru_block_kernel(x_ref, w3_ref, b3_ref, uzr_ref, uh_ref,   # inputs
                     h_out_ref,                                # output
                     ht_ref, xw_ref,                           # scratch
                     *, keep, t_block, batch):
    H = uh_ref.shape[0]

    @pl.when(pl.program_id(0) == 0)
    def _():
        ht_ref[...] = jnp.zeros_like(ht_ref)

    # Fused input projection for the whole time block (wide-N MXU matmul).
    xw_ref[...] = (
        jnp.dot(x_ref[...].astype(MATMUL_DTYPE),
                w3_ref[...].astype(MATMUL_DTYPE),
                preferred_element_type=jnp.float32)
        + b3_ref[...]
    )

    uzr = uzr_ref[...].astype(MATMUL_DTYPE)
    uh = uh_ref[...].astype(MATMUL_DTYPE)

    # Sequential recurrence over the T_BLOCK steps of this block (static unroll).
    for t in range(t_block):
        r0 = t * batch
        ht = ht_ref[...]                                     # (B, H) f32 carry
        g_zr = xw_ref[r0:r0 + batch, 0:2 * H]                # fused z|r inputs
        g_h = xw_ref[r0:r0 + batch, 2 * H:3 * H]             # h-candidate input

        zr = jax.nn.sigmoid(
            g_zr + jnp.dot(ht.astype(MATMUL_DTYPE), uzr,
                           preferred_element_type=jnp.float32))
        zt = zr[:, 0:H]
        rt = zr[:, H:2 * H]

        at = g_h + jnp.dot((rt * ht).astype(MATMUL_DTYPE), uh,
                           preferred_element_type=jnp.float32)
        hcand = jnp.tanh(at) * keep                          # eval-mode dropout
        ht_new = zt * ht + (1.0 - zt) * hcand

        ht_ref[...] = ht_new
        h_out_ref[r0:r0 + batch, :] = ht_new


def _pick_t_block(seq_len, batch, max_steps=32):
    """Largest time-block <= max_steps dividing seq_len with (tb*B) % 8 == 0."""
    for tb in range(min(seq_len, max_steps), 0, -1):
        if seq_len % tb == 0 and (tb * batch) % 8 == 0:
            return tb
    return seq_len  # full-extent block is always layout-legal


def gru_recurrence_fused(x2d, w3T, b3, uzrT, uhT, *, batch, keep, t_block):
    N, D = x2d.shape            # N = S * B, time-major rows
    H = uhT.shape[0]
    rows = t_block * batch
    n_blocks = N // rows

    kern = functools.partial(gru_block_kernel, keep=keep,
                             t_block=t_block, batch=batch)
    return pl.pallas_call(
        kern,
        out_shape=jax.ShapeDtypeStruct((N, H), jnp.float32),
        grid_spec=pltpu.PrefetchScalarGridSpec(
            num_scalar_prefetch=0,
            grid=(n_blocks,),
            in_specs=[
                pl.BlockSpec((rows, D), lambda t: (t, 0)),        # x stream
                pl.BlockSpec((D, 3 * H), lambda t: (0, 0)),       # fused W (resident)
                pl.BlockSpec((1, 3 * H), lambda t: (0, 0)),       # fused bias
                pl.BlockSpec((H, 2 * H), lambda t: (0, 0)),       # fused Uz|Ur
                pl.BlockSpec((H, H), lambda t: (0, 0)),           # Uh
            ],
            out_specs=pl.BlockSpec((rows, H), lambda t: (t, 0)),
            scratch_shapes=[
                pltpu.VMEM((batch, H), jnp.float32),              # ht carry
                pltpu.VMEM((rows, 3 * H), jnp.float32),           # block projections
            ],
        ),
        compiler_params=pltpu.CompilerParams(
            dimension_semantics=("arbitrary",)),                  # sequential time
    )(x2d, w3T, b3, uzrT, uhT)


# ----------------------------------------------------------------------------
# Kernel 2: final head = linear (BN scale pre-folded into the weight)
#           + LogSoftmax(dim=1), row-tiled with a parallel grid.
# ----------------------------------------------------------------------------
def final_head_kernel(h_ref, wT_ref, o_ref):
    y = jnp.dot(h_ref[...].astype(MATMUL_DTYPE),
                wT_ref[...].astype(MATMUL_DTYPE),
                preferred_element_type=jnp.float32)
    m = jnp.max(y, axis=1, keepdims=True)
    lse = jnp.log(jnp.sum(jnp.exp(y - m), axis=1, keepdims=True)) + m
    o_ref[...] = y - lse


def final_head(h2d, wT_bn, *, max_rows=1024):
    N, H = h2d.shape
    OUT = wT_bn.shape[1]
    tr = N if N <= max_rows else max_rows
    n_pad = (-N) % tr
    h_in = jnp.pad(h2d, ((0, n_pad), (0, 0))) if n_pad else h2d
    Np = N + n_pad

    out = pl.pallas_call(
        final_head_kernel,
        out_shape=jax.ShapeDtypeStruct((Np, OUT), jnp.float32),
        grid_spec=pltpu.PrefetchScalarGridSpec(
            num_scalar_prefetch=0,
            grid=(Np // tr,),
            in_specs=[
                pl.BlockSpec((tr, H), lambda i: (i, 0)),
                pl.BlockSpec((H, OUT), lambda i: (0, 0)),
            ],
            out_specs=pl.BlockSpec((tr, OUT), lambda i: (i, 0)),
        ),
        compiler_params=pltpu.CompilerParams(
            dimension_semantics=("parallel",)),
    )(h_in, wT_bn)
    return out[:N] if n_pad else out


# ----------------------------------------------------------------------------
# Parameter preparation (one-time fusion / constant folding)
# ----------------------------------------------------------------------------
def prepare_params(p, bn_eps=1e-5):
    bn_scale = (1.0 + bn_eps) ** -0.5   # eval-mode final_bn with default stats
    return {
        "w3T": jnp.concatenate([p["wzT"], p["wrT"], p["whT"]], axis=1),  # (D, 3H)
        "b3": jnp.concatenate([p["bz"], p["br"], p["bh"]], axis=1),      # (1, 3H)
        "uzrT": jnp.concatenate([p["uzT"], p["urT"]], axis=1),           # (H, 2H)
        "uhT": p["uhT"],                                                 # (H, H)
        "wfinT_bn": p["wfinT"] * bn_scale,                               # (H, OUT)
    }


# ----------------------------------------------------------------------------
# Full GRU forward (glue in plain JAX)
# ----------------------------------------------------------------------------
def gru_forward(x, prep, *, drop, t_block=None):
    # x: (seq, batch, inp_dim), time-major as in the PyTorch module
    S, B, D = x.shape
    keep = 1.0 - drop
    if t_block is None:
        t_block = _pick_t_block(S, B)

    x2d = x.reshape(S * B, D)
    h2d = gru_recurrence_fused(x2d, prep["w3T"], prep["b3"],
                               prep["uzrT"], prep["uhT"],
                               batch=B, keep=keep, t_block=t_block)
    ws = final_head(h2d, prep["wfinT_bn"])
    return ws  # (seq*batch, out_dim), log-probabilities


# ----------------------------------------------------------------------------
# Pure-JAX reference for correctness checking (uses the RAW, unfused params)
# ----------------------------------------------------------------------------
def gru_reference(x, params, *, drop, bn_eps=1e-5):
    S, B, D = x.shape
    H = params["uhT"].shape[0]
    keep = 1.0 - drop
    wh_out = x @ params["whT"] + params["bh"]
    wz_out = x @ params["wzT"] + params["bz"]
    wr_out = x @ params["wrT"] + params["br"]

    def step(ht, inputs):
        wz_k, wr_k, wh_k = inputs
        zt = jax.nn.sigmoid(wz_k + ht @ params["uzT"])
        rt = jax.nn.sigmoid(wr_k + ht @ params["urT"])
        at = wh_k + (rt * ht) @ params["uhT"]
        hcand = jnp.tanh(at) * keep
        ht = zt * ht + (1.0 - zt) * hcand
        return ht, ht

    _, h = jax.lax.scan(step, jnp.zeros((B, H), jnp.float32),
                        (wz_out, wr_out, wh_out))
    y = h.reshape(S * B, H) @ params["wfinT"]
    y = y / jnp.sqrt(1.0 + bn_eps)
    return jax.nn.log_softmax(y, axis=1)


# ----------------------------------------------------------------------------
def init_params(key, inp_dim, hidden, out_dim):
    ks = jax.random.split(key, 10)
    s_in = 1.0 / jnp.sqrt(inp_dim)
    s_h = 1.0 / jnp.sqrt(hidden)
    s_fin = jnp.sqrt(0.01 / (hidden + out_dim))
    u = lambda k, shp, s: jax.random.uniform(k, shp, jnp.float32, -s, s)
    return {
        # Linear weights stored pre-transposed: (in, out)
        "whT": u(ks[0], (inp_dim, hidden), s_in),
        "wzT": u(ks[1], (inp_dim, hidden), s_in),
        "wrT": u(ks[2], (inp_dim, hidden), s_in),
        "bh": u(ks[3], (1, hidden), s_in),
        "bz": u(ks[4], (1, hidden), s_in),
        "br": u(ks[5], (1, hidden), s_in),
        "uhT": u(ks[6], (hidden, hidden), s_h),
        "uzT": u(ks[7], (hidden, hidden), s_h),
        "urT": u(ks[8], (hidden, hidden), s_h),
        "wfinT": u(ks[9], (hidden, out_dim), s_fin),
    }


if __name__ == "__main__":
    SEQ, BATCH, INP, HID, OUT = 8, 2, 16, 32, 16
    DROP = 0.2

    key = jax.random.PRNGKey(0)
    k_x, k_p = jax.random.split(key)
    x = jax.random.normal(k_x, (SEQ, BATCH, INP), jnp.float32)
    params = init_params(k_p, INP, HID, OUT)
    prep = prepare_params(params)

    out = gru_forward(x, prep, drop=DROP)
    out = jax.block_until_ready(out)

    ref = gru_reference(x, params, drop=DROP)
    assert out.shape == (SEQ * BATCH, OUT)
    assert jnp.allclose(out, ref, atol=1e-4, rtol=1e-4), "mismatch vs reference"

    print("KERNEL_OK")
</pallas_src>

<mosaic_0001>
module attributes {stable_mosaic.version = 11 : i64} {
  func.func @gru_block_kernel(%arg0: i32, %arg1: memref<16x16xf32, #tpu.memory_space<vmem>>, %arg2: memref<16x96xf32, #tpu.memory_space<vmem>>, %arg3: memref<1x96xf32, #tpu.memory_space<vmem>>, %arg4: memref<32x64xf32, #tpu.memory_space<vmem>>, %arg5: memref<32x32xf32, #tpu.memory_space<vmem>>, %arg6: memref<16x32xf32, #tpu.memory_space<vmem>>, %arg7: memref<2x32xf32, #tpu.memory_space<vmem>>, %arg8: memref<16x96xf32, #tpu.memory_space<vmem>>) attributes {dimension_semantics = [#tpu.dimension_semantics<arbitrary>], iteration_bounds = array<i64: 1>, scalar_prefetch = 0 : i64, scratch_operands = 2 : i64, tpu.core_type = #tpu.core_type<tc>, window_params = [{transform_indices = @transform_0, window_bounds = array<i64: 16, 16>}, {pipeline_mode = #tpu.pipeline_mode<synchronous>, transform_indices = @transform_1, window_bounds = array<i64: 16, 96>}, {pipeline_mode = #tpu.pipeline_mode<synchronous>, transform_indices = @transform_2, window_bounds = array<i64: 1, 96>}, {pipeline_mode = #tpu.pipeline_mode<synchronous>, transform_indices = @transform_3, window_bounds = array<i64: 32, 64>}, {pipeline_mode = #tpu.pipeline_mode<synchronous>, transform_indices = @transform_4, window_bounds = array<i64: 32, 32>}, {transform_indices = @transform_5, window_bounds = array<i64: 16, 32>}]} {
    %c0_i32 = arith.constant 0 : i32
    %0 = arith.cmpi eq, %arg0, %c0_i32 : i32
    %1 = arith.extui %0 : i1 to i32
    %c0_i32_0 = arith.constant 0 : i32
    %2 = arith.cmpi ne, %1, %c0_i32_0 : i32
    scf.if %2 {
      %cst_124 = arith.constant 0.000000e+00 : f32
      %212 = vector.broadcast %cst_124 : f32 to vector<2x32xf32>
      %c0_125 = arith.constant 0 : index
      %c0_126 = arith.constant 0 : index
      %213 = vector.load %arg7[%c0_125, %c0_126] : memref<2x32xf32, #tpu.memory_space<vmem>>, vector<2x32xf32>
      tpu.vector_store %arg7[%c0_125, %c0_126], %212 {strides = array<i32>} : memref<2x32xf32, #tpu.memory_space<vmem>>, vector<2x32xf32>,
    } else {
    }
    %c0 = arith.constant 0 : index
    %c0_1 = arith.constant 0 : index
    %3 = vector.load %arg1[%c0, %c0_1] : memref<16x16xf32, #tpu.memory_space<vmem>>, vector<16x16xf32>
    %c0_2 = arith.constant 0 : index
    %c0_3 = arith.constant 0 : index
    %4 = vector.load %arg2[%c0_2, %c0_3] : memref<16x96xf32, #tpu.memory_space<vmem>>, vector<16x96xf32>
    %cst = arith.constant dense<0.000000e+00> : vector<16x96xf32>
    %5 = tpu.matmul %3, %4, %cst {dimension_numbers = #tpu.dot_dimension_numbers<[1], [0], [0], [1], [0, 0, 1, 1], [], []>} : vector<16x16xf32>, vector<16x96xf32>, vector<16x96xf32> -> vector<16x96xf32>
    %c0_4 = arith.constant 0 : index
    %c0_5 = arith.constant 0 : index
    %6 = vector.load %arg3[%c0_4, %c0_5] : memref<1x96xf32, #tpu.memory_space<vmem>>, vector<1x96xf32>
    %7 = vector.broadcast %6 : vector<1x96xf32> to vector<16x96xf32>
    %8 = arith.addf %5, %7 : vector<16x96xf32>
    %c0_6 = arith.constant 0 : index
    %c0_7 = arith.constant 0 : index
    %9 = vector.load %arg8[%c0_6, %c0_7] : memref<16x96xf32, #tpu.memory_space<vmem>>, vector<16x96xf32>
    tpu.vector_store %arg8[%c0_6, %c0_7], %8 {strides = array<i32>} : memref<16x96xf32, #tpu.memory_space<vmem>>, vector<16x96xf32>,
    %c0_8 = arith.constant 0 : index
    %c0_9 = arith.constant 0 : index
    %10 = vector.load %arg4[%c0_8, %c0_9] : memref<32x64xf32, #tpu.memory_space<vmem>>, vector<32x64xf32>
    %c0_10 = arith.constant 0 : index
    %c0_11 = arith.constant 0 : index
    %11 = vector.load %arg5[%c0_10, %c0_11] : memref<32x32xf32, #tpu.memory_space<vmem>>, vector<32x32xf32>
    %c0_12 = arith.constant 0 : index
    %c0_13 = arith.constant 0 : index
    %12 = vector.load %arg7[%c0_12, %c0_13] : memref<2x32xf32, #tpu.memory_space<vmem>>, vector<2x32xf32>
    %c0_14 = arith.constant 0 : index
    %c0_15 = arith.constant 0 : index
    %13 = vector.load %arg8[%c0_14, %c0_15] : memref<16x96xf32, #tpu.memory_space<vmem>>, vector<2x64xf32>
    %c0_16 = arith.constant 0 : index
    %c64 = arith.constant 64 : index
    %14 = vector.load %arg8[%c0_16, %c64] : memref<16x96xf32, #tpu.memory_space<vmem>>, vector<2x32xf32>
    %cst_17 = arith.constant dense<0.000000e+00> : vector<2x64xf32>
    %15 = tpu.matmul %12, %10, %cst_17 {dimension_numbers = #tpu.dot_dimension_numbers<[1], [0], [0], [1], [0, 0, 1, 1], [], []>} : vector<2x32xf32>, vector<32x64xf32>, vector<2x64xf32> -> vector<2x64xf32>
    %16 = arith.addf %13, %15 : vector<2x64xf32>
    %17 = arith.negf %16 : vector<2x64xf32>
    %18 = math.exp %17 : vector<2x64xf32>
    %cst_18 = arith.constant 1.000000e+00 : f32
    %19 = vector.broadcast %cst_18 : f32 to vector<2x64xf32>
    %20 = arith.addf %19, %18 : vector<2x64xf32>
    %21 = arith.divf %19, %20 : vector<2x64xf32>
    %22 = vector.extract_strided_slice %21 {offsets = [0, 0], sizes = [2, 32], strides = [1, 1]} : vector<2x64xf32> to vector<2x32xf32>
    %23 = vector.extract_strided_slice %21 {offsets = [0, 32], sizes = [2, 32], strides = [1, 1]} : vector<2x64xf32> to vector<2x32xf32>
    %24 = arith.mulf %23, %12 : vector<2x32xf32>
    %cst_19 = arith.constant dense<0.000000e+00> : vector<2x32xf32>
    %25 = tpu.matmul %24, %11, %cst_19 {dimension_numbers = #tpu.dot_dimension_numbers<[1], [0], [0], [1], [0, 0, 1, 1], [], []>} : vector<2x32xf32>, vector<32x32xf32>, vector<2x32xf32> -> vector<2x32xf32>
    %26 = arith.addf %14, %25 : vector<2x32xf32>
    %27 = math.tanh %26 : vector<2x32xf32>
    %cst_20 = arith.constant 8.000000e-01 : f32
    %28 = vector.broadcast %cst_20 : f32 to vector<2x32xf32>
    %29 = arith.mulf %27, %28 : vector<2x32xf32>
    %30 = arith.mulf %22, %12 : vector<2x32xf32>
    %cst_21 = arith.constant 1.000000e+00 : f32
    %31 = vector.broadcast %cst_21 : f32 to vector<2x32xf32>
    %32 = arith.subf %31, %22 : vector<2x32xf32>
    %33 = arith.mulf %32, %29 : vector<2x32xf32>
    %34 = arith.addf %30, %33 : vector<2x32xf32>
    %c0_22 = arith.constant 0 : index
    %c0_23 = arith.constant 0 : index
    %35 = vector.load %arg7[%c0_22, %c0_23] : memref<2x32xf32, #tpu.memory_space<vmem>>, vector<2x32xf32>
    tpu.vector_store %arg7[%c0_22, %c0_23], %34 {strides = array<i32>} : memref<2x32xf32, #tpu.memory_space<vmem>>, vector<2x32xf32>,
    %c0_24 = arith.constant 0 : index
    %c0_25 = arith.constant 0 : index
    %36 = vector.load %arg6[%c0_24, %c0_25] : memref<16x32xf32, #tpu.memory_space<vmem>>, vector<2x32xf32>
    tpu.vector_store %arg6[%c0_24, %c0_25], %34 {strides = array<i32>} : memref<16x32xf32, #tpu.memory_space<vmem>>, vector<2x32xf32>,
    %c0_26 = arith.constant 0 : index
    %c0_27 = arith.constant 0 : index
    %37 = vector.load %arg7[%c0_26, %c0_27] : memref<2x32xf32, #tpu.memory_space<vmem>>, vector<2x32xf32>
    %c2 = arith.constant 2 : index
    %c0_28 = arith.constant 0 : index
    %38 = vector.load %arg8[%c2, %c0_28] : memref<16x96xf32, #tpu.memory_space<vmem>>, vector<2x64xf32>
    %c2_29 = arith.constant 2 : index
    %c64_30 = arith.constant 64 : index
    %39 = vector.load %arg8[%c2_29, %c64_30] : memref<16x96xf32, #tpu.memory_space<vmem>>, vector<2x32xf32>
    %cst_31 = arith.constant dense<0.000000e+00> : vector<2x64xf32>
    %40 = tpu.matmul %37, %10, %cst_31 {dimension_numbers = #tpu.dot_dimension_numbers<[1], [0], [0], [1], [0, 0, 1, 1], [], []>} : vector<2x32xf32>, vector<32x64xf32>, vector<2x64xf32> -> vector<2x64xf32>
    %41 = arith.addf %38, %40 : vector<2x64xf32>
    %42 = arith.negf %41 : vector<2x64xf32>
    %43 = math.exp %42 : vector<2x64xf32>
    %cst_32 = arith.constant 1.000000e+00 : f32
    %44 = vector.broadcast %cst_32 : f32 to vector<2x64xf32>
    %45 = arith.addf %44, %43 : vector<2x64xf32>
    %46 = arith.divf %44, %45 : vector<2x64xf32>
    %47 = vector.extract_strided_slice %46 {offsets = [0, 0], sizes = [2, 32], strides = [1, 1]} : vector<2x64xf32> to vector<2x32xf32>
    %48 = vector.extract_strided_slice %46 {offsets = [0, 32], sizes = [2, 32], strides = [1, 1]} : vector<2x64xf32> to vector<2x32xf32>
    %49 = arith.mulf %48, %37 : vector<2x32xf32>
    %cst_33 = arith.constant dense<0.000000e+00> : vector<2x32xf32>
    %50 = tpu.matmul %49, %11, %cst_33 {dimension_numbers = #tpu.dot_dimension_numbers<[1], [0], [0], [1], [0, 0, 1, 1], [], []>} : vector<2x32xf32>, vector<32x32xf32>, vector<2x32xf32> -> vector<2x32xf32>
    %51 = arith.addf %39, %50 : vector<2x32xf32>
    %52 = math.tanh %51 : vector<2x32xf32>
    %cst_34 = arith.constant 8.000000e-01 : f32
    %53 = vector.broadcast %cst_34 : f32 to vector<2x32xf32>
    %54 = arith.mulf %52, %53 : vector<2x32xf32>
    %55 = arith.mulf %47, %37 : vector<2x32xf32>
    %cst_35 = arith.constant 1.000000e+00 : f32
    %56 = vector.broadcast %cst_35 : f32 to vector<2x32xf32>
    %57 = arith.subf %56, %47 : vector<2x32xf32>
    %58 = arith.mulf %57, %54 : vector<2x32xf32>
    %59 = arith.addf %55, %58 : vector<2x32xf32>
    %c0_36 = arith.constant 0 : index
    %c0_37 = arith.constant 0 : index
    %60 = vector.load %arg7[%c0_36, %c0_37] : memref<2x32xf32, #tpu.memory_space<vmem>>, vector<2x32xf32>
    tpu.vector_store %arg7[%c0_36, %c0_37], %59 {strides = array<i32>} : memref<2x32xf32, #tpu.memory_space<vmem>>, vector<2x32xf32>,
    %c2_38 = arith.constant 2 : index
    %c0_39 = arith.constant 0 : index
    %61 = vector.load %arg6[%c2_38, %c0_39] : memref<16x32xf32, #tpu.memory_space<vmem>>, vector<2x32xf32>
    tpu.vector_store %arg6[%c2_38, %c0_39], %59 {strides = array<i32>} : memref<16x32xf32, #tpu.memory_space<vmem>>, vector<2x32xf32>,
    %c0_40 = arith.constant 0 : index
    %c0_41 = arith.constant 0 : index
    %62 = vector.load %arg7[%c0_40, %c0_41] : memref<2x32xf32, #tpu.memory_space<vmem>>, vector<2x32xf32>
    %c4 = arith.constant 4 : index
    %c0_42 = arith.constant 0 : index
    %63 = vector.load %arg8[%c4, %c0_42] : memref<16x96xf32, #tpu.memory_space<vmem>>, vector<2x64xf32>
    %c4_43 = arith.constant 4 : index
    %c64_44 = arith.constant 64 : index
    %64 = vector.load %arg8[%c4_43, %c64_44] : memref<16x96xf32, #tpu.memory_space<vmem>>, vector<2x32xf32>
    %cst_45 = arith.constant dense<0.000000e+00> : vector<2x64xf32>
    %65 = tpu.matmul %62, %10, %cst_45 {dimension_numbers = #tpu.dot_dimension_numbers<[1], [0], [0], [1], [0, 0, 1, 1], [], []>} : vector<2x32xf32>, vector<32x64xf32>, vector<2x64xf32> -> vector<2x64xf32>
    %66 = arith.addf %63, %65 : vector<2x64xf32>
    %67 = arith.negf %66 : vector<2x64xf32>
    %68 = math.exp %67 : vector<2x64xf32>
    %cst_46 = arith.constant 1.000000e+00 : f32
    %69 = vector.broadcast %cst_46 : f32 to vector<2x64xf32>
    %70 = arith.addf %69, %68 : vector<2x64xf32>
    %71 = arith.divf %69, %70 : vector<2x64xf32>
    %72 = vector.extract_strided_slice %71 {offsets = [0, 0], sizes = [2, 32], strides = [1, 1]} : vector<2x64xf32> to vector<2x32xf32>
    %73 = vector.extract_strided_slice %71 {offsets = [0, 32], sizes = [2, 32], strides = [1, 1]} : vector<2x64xf32> to vector<2x32xf32>
    %74 = arith.mulf %73, %62 : vector<2x32xf32>
    %cst_47 = arith.constant dense<0.000000e+00> : vector<2x32xf32>
    %75 = tpu.matmul %74, %11, %cst_47 {dimension_numbers = #tpu.dot_dimension_numbers<[1], [0], [0], [1], [0, 0, 1, 1], [], []>} : vector<2x32xf32>, vector<32x32xf32>, vector<2x32xf32> -> vector<2x32xf32>
    %76 = arith.addf %64, %75 : vector<2x32xf32>
    %77 = math.tanh %76 : vector<2x32xf32>
    %cst_48 = arith.constant 8.000000e-01 : f32
    %78 = vector.broadcast %cst_48 : f32 to vector<2x32xf32>
    %79 = arith.mulf %77, %78 : vector<2x32xf32>
    %80 = arith.mulf %72, %62 : vector<2x32xf32>
    %cst_49 = arith.constant 1.000000e+00 : f32
    %81 = vector.broadcast %cst_49 : f32 to vector<2x32xf32>
    %82 = arith.subf %81, %72 : vector<2x32xf32>
    %83 = arith.mulf %82, %79 : vector<2x32xf32>
    %84 = arith.addf %80, %83 : vector<2x32xf32>
    %c0_50 = arith.constant 0 : index
    %c0_51 = arith.constant 0 : index
    %85 = vector.load %arg7[%c0_50, %c0_51] : memref<2x32xf32, #tpu.memory_space<vmem>>, vector<2x32xf32>
    tpu.vector_store %arg7[%c0_50, %c0_51], %84 {strides = array<i32>} : memref<2x32xf32, #tpu.memory_space<vmem>>, vector<2x32xf32>,
    %c4_52 = arith.constant 4 : index
    %c0_53 = arith.constant 0 : index
    %86 = vector.load %arg6[%c4_52, %c0_53] : memref<16x32xf32, #tpu.memory_space<vmem>>, vector<2x32xf32>
    tpu.vector_store %arg6[%c4_52, %c0_53], %84 {strides = array<i32>} : memref<16x32xf32, #tpu.memory_space<vmem>>, vector<2x32xf32>,
    %c0_54 = arith.constant 0 : index
    %c0_55 = arith.constant 0 : index
    %87 = vector.load %arg7[%c0_54, %c0_55] : memref<2x32xf32, #tpu.memory_space<vmem>>, vector<2x32xf32>
    %c6 = arith.constant 6 : index
    %c0_56 = arith.constant 0 : index
    %88 = vector.load %arg8[%c6, %c0_56] : memref<16x96xf32, #tpu.memory_space<vmem>>, vector<2x64xf32>
    %c6_57 = arith.constant 6 : index
    %c64_58 = arith.constant 64 : index
    %89 = vector.load %arg8[%c6_57, %c64_58] : memref<16x96xf32, #tpu.memory_space<vmem>>, vector<2x32xf32>
    %cst_59 = arith.constant dense<0.000000e+00> : vector<2x64xf32>
    %90 = tpu.matmul %87, %10, %cst_59 {dimension_numbers = #tpu.dot_dimension_numbers<[1], [0], [0], [1], [0, 0, 1, 1], [], []>} : vector<2x32xf32>, vector<32x64xf32>, vector<2x64xf32> -> vector<2x64xf32>
    %91 = arith.addf %88, %90 : vector<2x64xf32>
    %92 = arith.negf %91 : vector<2x64xf32>
    %93 = math.exp %92 : vector<2x64xf32>
    %cst_60 = arith.constant 1.000000e+00 : f32
    %94 = vector.broadcast %cst_60 : f32 to vector<2x64xf32>
    %95 = arith.addf %94, %93 : vector<2x64xf32>
    %96 = arith.divf %94, %95 : vector<2x64xf32>
    %97 = vector.extract_strided_slice %96 {offsets = [0, 0], sizes = [2, 32], strides = [1, 1]} : vector<2x64xf32> to vector<2x32xf32>
    %98 = vector.extract_strided_slice %96 {offsets = [0, 32], sizes = [2, 32], strides = [1, 1]} : vector<2x64xf32> to vector<2x32xf32>
    %99 = arith.mulf %98, %87 : vector<2x32xf32>
    %cst_61 = arith.constant dense<0.000000e+00> : vector<2x32xf32>
    %100 = tpu.matmul %99, %11, %cst_61 {dimension_numbers = #tpu.dot_dimension_numbers<[1], [0], [0], [1], [0, 0, 1, 1], [], []>} : vector<2x32xf32>, vector<32x32xf32>, vector<2x32xf32> -> vector<2x32xf32>
    %101 = arith.addf %89, %100 : vector<2x32xf32>
    %102 = math.tanh %101 : vector<2x32xf32>
    %cst_62 = arith.constant 8.000000e-01 : f32
    %103 = vector.broadcast %cst_62 : f32 to vector<2x32xf32>
    %104 = arith.mulf %102, %103 : vector<2x32xf32>
    %105 = arith.mulf %97, %87 : vector<2x32xf32>
    %cst_63 = arith.constant 1.000000e+00 : f32
    %106 = vector.broadcast %cst_63 : f32 to vector<2x32xf32>
    %107 = arith.subf %106, %97 : vector<2x32xf32>
    %108 = arith.mulf %107, %104 : vector<2x32xf32>
    %109 = arith.addf %105, %108 : vector<2x32xf32>
    %c0_64 = arith.constant 0 : index
    %c0_65 = arith.constant 0 : index
    %110 = vector.load %arg7[%c0_64, %c0_65] : memref<2x32xf32, #tpu.memory_space<vmem>>, vector<2x32xf32>
    tpu.vector_store %arg7[%c0_64, %c0_65], %109 {strides = array<i32>} : memref<2x32xf32, #tpu.memory_space<vmem>>, vector<2x32xf32>,
    %c6_66 = arith.constant 6 : index
    %c0_67 = arith.constant 0 : index
    %111 = vector.load %arg6[%c6_66, %c0_67] : memref<16x32xf32, #tpu.memory_space<vmem>>, vector<2x32xf32>
    tpu.vector_store %arg6[%c6_66, %c0_67], %109 {strides = array<i32>} : memref<16x32xf32, #tpu.memory_space<vmem>>, vector<2x32xf32>,
    %c0_68 = arith.constant 0 : index
    %c0_69 = arith.constant 0 : index
    %112 = vector.load %arg7[%c0_68, %c0_69] : memref<2x32xf32, #tpu.memory_space<vmem>>, vector<2x32xf32>
    %c8 = arith.constant 8 : index
    %c0_70 = arith.constant 0 : index
    %113 = vector.load %arg8[%c8, %c0_70] : memref<16x96xf32, #tpu.memory_space<vmem>>, vector<2x64xf32>
    %c8_71 = arith.constant 8 : index
    %c64_72 = arith.constant 64 : index
    %114 = vector.load %arg8[%c8_71, %c64_72] : memref<16x96xf32, #tpu.memory_space<vmem>>, vector<2x32xf32>
    %cst_73 = arith.constant dense<0.000000e+00> : vector<2x64xf32>
    %115 = tpu.matmul %112, %10, %cst_73 {dimension_numbers = #tpu.dot_dimension_numbers<[1], [0], [0], [1], [0, 0, 1, 1], [], []>} : vector<2x32xf32>, vector<32x64xf32>, vector<2x64xf32> -> vector<2x64xf32>
    %116 = arith.addf %113, %115 : vector<2x64xf32>
    %117 = arith.negf %116 : vector<2x64xf32>
    %118 = math.exp %117 : vector<2x64xf32>
    %cst_74 = arith.constant 1.000000e+00 : f32
    %119 = vector.broadcast %cst_74 : f32 to vector<2x64xf32>
    %120 = arith.addf %119, %118 : vector<2x64xf32>
    %121 = arith.divf %119, %120 : vector<2x64xf32>
    %122 = vector.extract_strided_slice %121 {offsets = [0, 0], sizes = [2, 32], strides = [1, 1]} : vector<2x64xf32> to vector<2x32xf32>
    %123 = vector.extract_strided_slice %121 {offsets = [0, 32], sizes = [2, 32], strides = [1, 1]} : vector<2x64xf32> to vector<2x32xf32>
    %124 = arith.mulf %123, %112 : vector<2x32xf32>
    %cst_75 = arith.constant dense<0.000000e+00> : vector<2x32xf32>
    %125 = tpu.matmul %124, %11, %cst_75 {dimension_numbers = #tpu.dot_dimension_numbers<[1], [0], [0], [1], [0, 0, 1, 1], [], []>} : vector<2x32xf32>, vector<32x32xf32>, vector<2x32xf32> -> vector<2x32xf32>
    %126 = arith.addf %114, %125 : vector<2x32xf32>
    %127 = math.tanh %126 : vector<2x32xf32>
    %cst_76 = arith.constant 8.000000e-01 : f32
    %128 = vector.broadcast %cst_76 : f32 to vector<2x32xf32>
    %129 = arith.mulf %127, %128 : vector<2x32xf32>
    %130 = arith.mulf %122, %112 : vector<2x32xf32>
    %cst_77 = arith.constant 1.000000e+00 : f32
    %131 = vector.broadcast %cst_77 : f32 to vector<2x32xf32>
    %132 = arith.subf %131, %122 : vector<2x32xf32>
    %133 = arith.mulf %132, %129 : vector<2x32xf32>
    %134 = arith.addf %130, %133 : vector<2x32xf32>
    %c0_78 = arith.constant 0 : index
    %c0_79 = arith.constant 0 : index
    %135 = vector.load %arg7[%c0_78, %c0_79] : memref<2x32xf32, #tpu.memory_space<vmem>>, vector<2x32xf32>
    tpu.vector_store %arg7[%c0_78, %c0_79], %134 {strides = array<i32>} : memref<2x32xf32, #tpu.memory_space<vmem>>, vector<2x32xf32>,
    %c8_80 = arith.constant 8 : index
    %c0_81 = arith.constant 0 : index
    %136 = vector.load %arg6[%c8_80, %c0_81] : memref<16x32xf32, #tpu.memory_space<vmem>>, vector<2x32xf32>
    tpu.vector_store %arg6[%c8_80, %c0_81], %134 {strides = array<i32>} : memref<16x32xf32, #tpu.memory_space<vmem>>, vector<2x32xf32>,
    %c0_82 = arith.constant 0 : index
    %c0_83 = arith.constant 0 : index
    %137 = vector.load %arg7[%c0_82, %c0_83] : memref<2x32xf32, #tpu.memory_space<vmem>>, vector<2x32xf32>
    %c10 = arith.constant 10 : index
    %c0_84 = arith.constant 0 : index
    %138 = vector.load %arg8[%c10, %c0_84] : memref<16x96xf32, #tpu.memory_space<vmem>>, vector<2x64xf32>
    %c10_85 = arith.constant 10 : index
    %c64_86 = arith.constant 64 : index
    %139 = vector.load %arg8[%c10_85, %c64_86] : memref<16x96xf32, #tpu.memory_space<vmem>>, vector<2x32xf32>
    %cst_87 = arith.constant dense<0.000000e+00> : vector<2x64xf32>
    %140 = tpu.matmul %137, %10, %cst_87 {dimension_numbers = #tpu.dot_dimension_numbers<[1], [0], [0], [1], [0, 0, 1, 1], [], []>} : vector<2x32xf32>, vector<32x64xf32>, vector<2x64xf32> -> vector<2x64xf32>
    %141 = arith.addf %138, %140 : vector<2x64xf32>
    %142 = arith.negf %141 : vector<2x64xf32>
    %143 = math.exp %142 : vector<2x64xf32>
    %cst_88 = arith.constant 1.000000e+00 : f32
    %144 = vector.broadcast %cst_88 : f32 to vector<2x64xf32>
    %145 = arith.addf %144, %143 : vector<2x64xf32>
    %146 = arith.divf %144, %145 : vector<2x64xf32>
    %147 = vector.extract_strided_slice %146 {offsets = [0, 0], sizes = [2, 32], strides = [1, 1]} : vector<2x64xf32> to vector<2x32xf32>
    %148 = vector.extract_strided_slice %146 {offsets = [0, 32], sizes = [2, 32], strides = [1, 1]} : vector<2x64xf32> to vector<2x32xf32>
    %149 = arith.mulf %148, %137 : vector<2x32xf32>
    %cst_89 = arith.constant dense<0.000000e+00> : vector<2x32xf32>
    %150 = tpu.matmul %149, %11, %cst_89 {dimension_numbers = #tpu.dot_dimension_numbers<[1], [0], [0], [1], [0, 0, 1, 1], [], []>} : vector<2x32xf32>, vector<32x32xf32>, vector<2x32xf32> -> vector<2x32xf32>
    %151 = arith.addf %139, %150 : vector<2x32xf32>
    %152 = math.tanh %151 : vector<2x32xf32>
    %cst_90 = arith.constant 8.000000e-01 : f32
    %153 = vector.broadcast %cst_90 : f32 to vector<2x32xf32>
    %154 = arith.mulf %152, %153 : vector<2x32xf32>
    %155 = arith.mulf %147, %137 : vector<2x32xf32>
    %cst_91 = arith.constant 1.000000e+00 : f32
    %156 = vector.broadcast %cst_91 : f32 to vector<2x32xf32>
    %157 = arith.subf %156, %147 : vector<2x32xf32>
    %158 = arith.mulf %157, %154 : vector<2x32xf32>
    %159 = arith.addf %155, %158 : vector<2x32xf32>
    %c0_92 = arith.constant 0 : index
    %c0_93 = arith.constant 0 : index
    %160 = vector.load %arg7[%c0_92, %c0_93] : memref<2x32xf32, #tpu.memory_space<vmem>>, vector<2x32xf32>
    tpu.vector_store %arg7[%c0_92, %c0_93], %159 {strides = array<i32>} : memref<2x32xf32, #tpu.memory_space<vmem>>, vector<2x32xf32>,
    %c10_94 = arith.constant 10 : index
    %c0_95 = arith.constant 0 : index
    %161 = vector.load %arg6[%c10_94, %c0_95] : memref<16x32xf32, #tpu.memory_space<vmem>>, vector<2x32xf32>
    tpu.vector_store %arg6[%c10_94, %c0_95], %159 {strides = array<i32>} : memref<16x32xf32, #tpu.memory_space<vmem>>, vector<2x32xf32>,
    %c0_96 = arith.constant 0 : index
    %c0_97 = arith.constant 0 : index
    %162 = vector.load %arg7[%c0_96, %c0_97] : memref<2x32xf32, #tpu.memory_space<vmem>>, vector<2x32xf32>
    %c12 = arith.constant 12 : index
    %c0_98 = arith.constant 0 : index
    %163 = vector.load %arg8[%c12, %c0_98] : memref<16x96xf32, #tpu.memory_space<vmem>>, vector<2x64xf32>
    %c12_99 = arith.constant 12 : index
    %c64_100 = arith.constant 64 : index
    %164 = vector.load %arg8[%c12_99, %c64_100] : memref<16x96xf32, #tpu.memory_space<vmem>>, vector<2x32xf32>
    %cst_101 = arith.constant dense<0.000000e+00> : vector<2x64xf32>
    %165 = tpu.matmul %162, %10, %cst_101 {dimension_numbers = #tpu.dot_dimension_numbers<[1], [0], [0], [1], [0, 0, 1, 1], [], []>} : vector<2x32xf32>, vector<32x64xf32>, vector<2x64xf32> -> vector<2x64xf32>
    %166 = arith.addf %163, %165 : vector<2x64xf32>
    %167 = arith.negf %166 : vector<2x64xf32>
    %168 = math.exp %167 : vector<2x64xf32>
    %cst_102 = arith.constant 1.000000e+00 : f32
    %169 = vector.broadcast %cst_102 : f32 to vector<2x64xf32>
    %170 = arith.addf %169, %168 : vector<2x64xf32>
    %171 = arith.divf %169, %170 : vector<2x64xf32>
    %172 = vector.extract_strided_slice %171 {offsets = [0, 0], sizes = [2, 32], strides = [1, 1]} : vector<2x64xf32> to vector<2x32xf32>
    %173 = vector.extract_strided_slice %171 {offsets = [0, 32], sizes = [2, 32], strides = [1, 1]} : vector<2x64xf32> to vector<2x32xf32>
    %174 = arith.mulf %173, %162 : vector<2x32xf32>
    %cst_103 = arith.constant dense<0.000000e+00> : vector<2x32xf32>
    %175 = tpu.matmul %174, %11, %cst_103 {dimension_numbers = #tpu.dot_dimension_numbers<[1], [0], [0], [1], [0, 0, 1, 1], [], []>} : vector<2x32xf32>, vector<32x32xf32>, vector<2x32xf32> -> vector<2x32xf32>
    %176 = arith.addf %164, %175 : vector<2x32xf32>
    %177 = math.tanh %176 : vector<2x32xf32>
    %cst_104 = arith.constant 8.000000e-01 : f32
    %178 = vector.broadcast %cst_104 : f32 to vector<2x32xf32>
    %179 = arith.mulf %177, %178 : vector<2x32xf32>
    %180 = arith.mulf %172, %162 : vector<2x32xf32>
    %cst_105 = arith.constant 1.000000e+00 : f32
    %181 = vector.broadcast %cst_105 : f32 to vector<2x32xf32>
    %182 = arith.subf %181, %172 : vector<2x32xf32>
    %183 = arith.mulf %182, %179 : vector<2x32xf32>
    %184 = arith.addf %180, %183 : vector<2x32xf32>
    %c0_106 = arith.constant 0 : index
    %c0_107 = arith.constant 0 : index
    %185 = vector.load %arg7[%c0_106, %c0_107] : memref<2x32xf32, #tpu.memory_space<vmem>>, vector<2x32xf32>
    tpu.vector_store %arg7[%c0_106, %c0_107], %184 {strides = array<i32>} : memref<2x32xf32, #tpu.memory_space<vmem>>, vector<2x32xf32>,
    %c12_108 = arith.constant 12 : index
    %c0_109 = arith.constant 0 : index
    %186 = vector.load %arg6[%c12_108, %c0_109] : memref<16x32xf32, #tpu.memory_space<vmem>>, vector<2x32xf32>
    tpu.vector_store %arg6[%c12_108, %c0_109], %184 {strides = array<i32>} : memref<16x32xf32, #tpu.memory_space<vmem>>, vector<2x32xf32>,
    %c0_110 = arith.constant 0 : index
    %c0_111 = arith.constant 0 : index
    %187 = vector.load %arg7[%c0_110, %c0_111] : memref<2x32xf32, #tpu.memory_space<vmem>>, vector<2x32xf32>
    %c14 = arith.constant 14 : index
    %c0_112 = arith.constant 0 : index
    %188 = vector.load %arg8[%c14, %c0_112] : memref<16x96xf32, #tpu.memory_space<vmem>>, vector<2x64xf32>
    %c14_113 = arith.constant 14 : index
    %c64_114 = arith.constant 64 : index
    %189 = vector.load %arg8[%c14_113, %c64_114] : memref<16x96xf32, #tpu.memory_space<vmem>>, vector<2x32xf32>
    %cst_115 = arith.constant dense<0.000000e+00> : vector<2x64xf32>
    %190 = tpu.matmul %187, %10, %cst_115 {dimension_numbers = #tpu.dot_dimension_numbers<[1], [0], [0], [1], [0, 0, 1, 1], [], []>} : vector<2x32xf32>, vector<32x64xf32>, vector<2x64xf32> -> vector<2x64xf32>
    %191 = arith.addf %188, %190 : vector<2x64xf32>
    %192 = arith.negf %191 : vector<2x64xf32>
    %193 = math.exp %192 : vector<2x64xf32>
    %cst_116 = arith.constant 1.000000e+00 : f32
    %194 = vector.broadcast %cst_116 : f32 to vector<2x64xf32>
    %195 = arith.addf %194, %193 : vector<2x64xf32>
    %196 = arith.divf %194, %195 : vector<2x64xf32>
    %197 = vector.extract_strided_slice %196 {offsets = [0, 0], sizes = [2, 32], strides = [1, 1]} : vector<2x64xf32> to vector<2x32xf32>
    %198 = vector.extract_strided_slice %196 {offsets = [0, 32], sizes = [2, 32], strides = [1, 1]} : vector<2x64xf32> to vector<2x32xf32>
    %199 = arith.mulf %198, %187 : vector<2x32xf32>
    %cst_117 = arith.constant dense<0.000000e+00> : vector<2x32xf32>
    %200 = tpu.matmul %199, %11, %cst_117 {dimension_numbers = #tpu.dot_dimension_numbers<[1], [0], [0], [1], [0, 0, 1, 1], [], []>} : vector<2x32xf32>, vector<32x32xf32>, vector<2x32xf32> -> vector<2x32xf32>
    %201 = arith.addf %189, %200 : vector<2x32xf32>
    %202 = math.tanh %201 : vector<2x32xf32>
    %cst_118 = arith.constant 8.000000e-01 : f32
    %203 = vector.broadcast %cst_118 : f32 to vector<2x32xf32>
    %204 = arith.mulf %202, %203 : vector<2x32xf32>
    %205 = arith.mulf %197, %187 : vector<2x32xf32>
    %cst_119 = arith.constant 1.000000e+00 : f32
    %206 = vector.broadcast %cst_119 : f32 to vector<2x32xf32>
    %207 = arith.subf %206, %197 : vector<2x32xf32>
    %208 = arith.mulf %207, %204 : vector<2x32xf32>
    %209 = arith.addf %205, %208 : vector<2x32xf32>
    %c0_120 = arith.constant 0 : index
    %c0_121 = arith.constant 0 : index
    %210 = vector.load %arg7[%c0_120, %c0_121] : memref<2x32xf32, #tpu.memory_space<vmem>>, vector<2x32xf32>
    tpu.vector_store %arg7[%c0_120, %c0_121], %209 {strides = array<i32>} : memref<2x32xf32, #tpu.memory_space<vmem>>, vector<2x32xf32>,
    %c14_122 = arith.constant 14 : index
    %c0_123 = arith.constant 0 : index
    %211 = vector.load %arg6[%c14_122, %c0_123] : memref<16x32xf32, #tpu.memory_space<vmem>>, vector<2x32xf32>
    tpu.vector_store %arg6[%c14_122, %c0_123], %209 {strides = array<i32>} : memref<16x32xf32, #tpu.memory_space<vmem>>, vector<2x32xf32>,
    return
  }
  func.func @transform_0(%arg0: i32) -> (i32, i32) {
    %c0_i32 = arith.constant 0 : i32
    %c0_i32_0 = arith.constant 0 : i32
    return %arg0, %c0_i32 : i32, i32
  }
  func.func @transform_1(%arg0: i32) -> (i32, i32) {
    %c0_i32 = arith.constant 0 : i32
    %c0_i32_0 = arith.constant 0 : i32
    %c0_i32_1 = arith.constant 0 : i32
    return %c0_i32, %c0_i32_0 : i32, i32
  }
  func.func @transform_2(%arg0: i32) -> (i32, i32) {
    %c0_i32 = arith.constant 0 : i32
    %c0_i32_0 = arith.constant 0 : i32
    %c0_i32_1 = arith.constant 0 : i32
    return %c0_i32, %c0_i32_0 : i32, i32
  }
  func.func @transform_3(%arg0: i32) -> (i32, i32) {
    %c0_i32 = arith.constant 0 : i32
    %c0_i32_0 = arith.constant 0 : i32
    %c0_i32_1 = arith.constant 0 : i32
    return %c0_i32, %c0_i32_0 : i32, i32
  }
  func.func @transform_4(%arg0: i32) -> (i32, i32) {
    %c0_i32 = arith.constant 0 : i32
    %c0_i32_0 = arith.constant 0 : i32
    %c0_i32_1 = arith.constant 0 : i32
    return %c0_i32, %c0_i32_0 : i32, i32
  }
  func.func @transform_5(%arg0: i32) -> (i32, i32) {
    %c0_i32 = arith.constant 0 : i32
    %c0_i32_0 = arith.constant 0 : i32
    return %arg0, %c0_i32 : i32, i32
  }
}

</mosaic_0001>

<bundles_post_ra>
// kernel: tpu_custom_call.1
= control target key start
LH: loop header
LB: loop body
LE: loop exit
PB: predicated region body
PF: predicated region fallthrough
CT: control target
= control target key end

     0   :  { %10 = vsyncpa [#allocation5], 0  ;;  %s2417_s0 = inlined_call_operand.hbm [shape: f32[16,16], index: 0, kind: input, shape index: {}]   ;;  %s2418_s1 = inlined_call_operand.hbm [shape: f32[16,96], index: 1, kind: input, shape index: {}]   ;;  %s2419_s2 = inlined_call_operand.vmem [shape: f32[1,96], index: 2, kind: input, shape index: {}]   ;;  %s2420_s3 = inlined_call_operand.hbm [shape: f32[32,64], index: 3, kind: input, shape index: {}]   ;;  %s2421_s4 = inlined_call_operand.hbm [shape: f32[32,32], index: 4, kind: input, shape index: {}]   ;;  %s2422_s5 = inlined_call_operand.hbm [shape: f32[16,32], index: 5, kind: output, shape index: {}]  }
   0x1   :  { %11 = vsyncpa [#allocation8], 0 }
   0x2   :  { %12 = vsyncpa [#allocation11], 0 }
   0x3   :  { %13 = vsyncpa [#allocation6], 0  ;;  %s2093_s18 = smov [#allocation7]   ;;  %s2094_s20 = smov [#allocation4]  }
   0x4   :  { %s31_s19 = sshll.u32 %s2093_s18, 4  ;;  %s19_s21 = sshll.u32 %s2094_s20, 4  ;;  %s32_s19 = int_to_ptr.vmem [resolvable:$true] %s31_s19  ;;  %s20_s21 = int_to_ptr.vmem [resolvable:$true] %s19_s21 }
   0x5   :  { %s1993_s22 = scalar_lea.vmem %s32_s19, 256  ;;  %p1998_p1 = scmp.lt.s32.totalorder %s32_s19, %s32_s19 }
   0x6   :  { %p1994_p0 = scmp.ne.s32.totalorder %s32_s19, %s1993_s22  ;;  %p1999_p2 = scmp.lt.s32.totalorder %s1993_s22, %s1993_s22 }
   0x8   :  { %p2000_p3 = por %p1999_p2, %p1998_p1 }
   0xa   :  { %p2001_p4 = pnand %p2000_p3, %p1994_p0 }
   0xc   :  { %2004 = shalt.err (!%p2001_p4)
}
   0xd   :  { %s2095_s23 = smov 128   ;;  %s2096_s24 = smov 8  }
   0xe   :  { %37 = dma.hbm_to_vmem [thread:$0]  %s2418_s1, 256, %s32_s19, [#allocation8], %s2095_s23, %s2095_s23, %s2096_s24  }
   0xf   :  { %s2013_s27 = scalar_lea.vmem %s20_s21, 256  ;;  %p2018_p6 = scmp.lt.s32.totalorder %s20_s21, %s20_s21 }
  0x10   :  { %p2014_p5 = scmp.ne.s32.totalorder %s20_s21, %s2013_s27  ;;  %p2019_p7 = scmp.lt.s32.totalorder %s2013_s27, %s2013_s27 }
  0x12   :  { %p2020_p8 = por %p2019_p7, %p2018_p6 }
  0x14   :  { %p2021_p9 = pnand %p2020_p8, %p2014_p5 }
  0x16   :  { %2024 = shalt.err (!%p2021_p9)
}
  0x17   :  { %25 = dma.hbm_to_vmem [thread:$0]  %s2417_s0, 256, %s20_s21, [#allocation5], %s2095_s23, %s2095_s23, %s2096_s24  }
  0x18   :  { %s2097_s30 = smov [#allocation9]   ;;  %s2098_s7 = smov [#allocation10]  }
  0x19   :  { %s45_s6 = sshll.u32 %s2097_s30, 4  ;;  %s57_s8 = sshll.u32 %s2098_s7, 4  ;;  %s46_s6 = int_to_ptr.vmem [resolvable:$true] %s45_s6  ;;  %s58_s8 = int_to_ptr.vmem [resolvable:$true] %s57_s8 }
  0x1a   :  { %s2033_s1 = scalar_lea.vmem %s46_s6, 512  ;;  %p2038_p11 = scmp.lt.s32.totalorder %s46_s6, %s46_s6 }
  0x1b   :  { %p2034_p10 = scmp.ne.s32.totalorder %s46_s6, %s2033_s1  ;;  %p2039_p12 = scmp.lt.s32.totalorder %s2033_s1, %s2033_s1 }
  0x1d   :  { %p2040_p13 = por %p2039_p12, %p2038_p11 }
  0x1f   :  { %p2041_p0 = pnand %p2040_p13, %p2034_p10 }
  0x21   :  { %2044 = shalt.err (!%p2041_p0)
}
  0x22   :  { %51 = dma.hbm_to_vmem [thread:$0]  %s2420_s3, 512, %s46_s6, [#allocation8], %s2095_s23, %s2095_s23, %s2096_s24  }
  0x23   :  { %s2053_s0 = scalar_lea.vmem %s58_s8, 512  ;;  %p2058_p2 = scmp.lt.s32.totalorder %s58_s8, %s58_s8 }
  0x24   :  { %p2054_p1 = scmp.ne.s32.totalorder %s58_s8, %s2053_s0  ;;  %p2059_p3 = scmp.lt.s32.totalorder %s2053_s0, %s2053_s0 }
  0x26   :  { %p2060_p4 = por %p2059_p3, %p2058_p2 }
  0x28   :  { %p2061_p5 = pnand %p2060_p4, %p2054_p1 }
  0x2a   :  { %2064 = shalt.err (!%p2061_p5)
}
  0x2b   :  { %63 = dma.hbm_to_vmem [thread:$0]  %s2421_s4, 512, %s58_s8, [#allocation11], %s2095_s23, %s2095_s23, %s2096_s24  }
  0x2c   :  { %2085 = dma.done.wait [#allocation5], 256  }
  0x2d   :  { %2086 = vsyncadd [#allocation5], 4294967040 }
  0x2e   :  { %2087 = dma.done.wait [#allocation8], 768  }
  0x2f   :  { %2088 = vsyncadd [#allocation8], 4294966528 }
  0x30   :  { %2089 = dma.done.wait [#allocation11], 512  }
  0x31   :  { %2090 = vsyncadd [#allocation11], 4294966784  ;;  %vm80_vm0 = vcmask 254976   ;;  %v2099_v0 = vmov 0.0   ;;  %vm2100_vm1 = vmmov 0   ;;  %vm93_vm2 = vcmask 130048  }
  0x32   :  { %1749 = vmatprep.subr.mxu1 %v2099_v0  ;;  %1757 = vmatprep.mubr.msk.f32.mxu1 %vm2100_vm1, %v2099_v0  ;;  %81 = vst.msk [vmem:[#allocation2] sm:$0x3] %vm80_vm0, %v2099_v0  ;;  %v85_v1 = vld [vmem:[#allocation7 + $0x8] sm:$0xff]  ;;  %v84_v2 = vld [vmem:[#allocation7] sm:$0xff]  ;;  %v82_v3 = vld [vmem:[#allocation4] sm:$0xff]  ;;  %vm188_vm3 = vcmask 261120  }
  0x33   :  { %1742 = vmatprep.subr.mxu0 %v85_v1  ;;  %1746 = vmatprep.mubr.msk.f32.mxu0 %vm93_vm2, %v82_v3  ;;  %v2165_v4 = vld [vmem:[#allocation9 + $0x18] sm:$0xff]  ;;  %v2167_v5 = vld [vmem:[#allocation9 + $0x10] sm:$0xff]  ;;  %v83_v6 = vld [vmem:[#allocation4 + $0x8] sm:$0xff]  ;;  %s2101_s3 = smov 32   ;;  %vm175_vm4 = vcmask 785408   ;;  %s2103_s14 = smov 64  }
  0x34   :  { %1743 = vmatpush3.msra.mxu0 %v85_v1  ;;  %1750 = vmatpush3.msra.mxu1 %v2165_v4  ;;  %v2171_v7 = vld [vmem:[#allocation9 + $0x8] sm:$0xff]  ;;  %v2176_v8 = vld [vmem:[#allocation9] sm:$0xff]  ;;  %v2201_v10 = vld [vmem:[#allocation10 + $0x18] sm:$0xff]  ;;  %s2104_s15 = smov [#allocation12]  }
  0x35   :  { %1744 = vmatprep.subr.mxu0 %v84_v2  ;;  %1751 = vmatprep.subr.mxu1 %v2099_v0  ;;  %v2203_v11 = vld [vmem:[#allocation10 + $0x10] sm:$0xff]  ;;  %v2207_v12 = vld [vmem:[#allocation10 + $0x8] sm:$0xff]  ;;  %v2211_v13 = vld [vmem:[#allocation10] sm:$0xff]  ;;  %s1617_s16 = sshll.u32 %s2104_s15, 4  ;;  %s1618_s16 = int_to_ptr.vmem [resolvable:$true] %s1617_s16 }
  0x36   :  { %1745 = vmatpush3.msra.mxu0 %v84_v2  ;;  %1752 = vmatpush3.msra.mxu1 %v2167_v5  ;;  %v1631_v14 = vld [vmem:[%s2419_s2] ss:$0 sm:$0xff]  ;;  %s2102_s2 = smov 96   ;;  %s2065_s17 = scalar_lea.vmem %s1618_s16, 256 }
  0x37   :  { %1747 = vmatmul.mubr.msk.f32.vlgmr.msra.gmra.mxu0 %vm93_vm2, %v83_v6  ;;  %1753 = vmatprep.subr.mxu1 %v2099_v0  ;;  %p2066_p6 = scmp.ne.s32.totalorder %s1618_s16, %s2065_s17  ;;  %p2070_p7 = scmp.lt.s32.totalorder %s1618_s16, %s1618_s16 }
  0x38   :  { %1754 = vmatpush3.msra.mxu1 %v2171_v7  ;;  %1760 = vmatprep.subr.mxu0 %v2099_v0  ;;  %p2071_p8 = scmp.lt.s32.totalorder %s2065_s17, %s2065_s17 }
  0x39   :  { %v2178_v9 = vld [vmem:[#allocation2] sm:$0x3]  ;;  %1755 = vmatprep.subr.mxu1 %v2099_v0  ;;  %1768 = vmatprep.mubr.msk.f32.mxu0 %vm2100_vm1, %v2099_v0 }
  0x3a   :  { %269 = vrot.lane.b32.xlu0 %v2178_v9, %s2101_s3  ;;  %1756 = vmatpush3.msra.mxu1 %v2176_v8  ;;  %p2072_p9 = por %p2071_p8, %p2070_p7 }
  0x3b   :  { %1758 = vmatmul.mubr.msk.f32.vlgmr.msra.gmra.mxu1 %vm188_vm3, %v2178_v9  ;;  %1771 = vmatprep.subr.mxu1 %v2099_v0 }
  0x3c   :  { %1772 = vmatpush3.msra.mxu1 %v2165_v4  ;;  %1779 = vmatprep.mubr.msk.f32.mxu1 %vm2100_vm1, %v2099_v0  ;;  %p2073_p10 = pnand %p2072_p9, %p2066_p6 }
  0x3d   :  { %1773 = vmatprep.subr.mxu1 %v2099_v0  ;;  %1761 = vmatpush3.msra.mxu0 %v2201_v10 }
  0x3e   :  { %1774 = vmatpush3.msra.mxu1 %v2167_v5  ;;  %1762 = vmatprep.subr.mxu0 %v2099_v0 }
  0x3f   :  { %1775 = vmatprep.subr.mxu1 %v2099_v0  ;;  %1763 = vmatpush3.msra.mxu0 %v2203_v11 }
  0x40   :  { %1776 = vmatpush3.msra.mxu1 %v2171_v7  ;;  %1764 = vmatprep.subr.mxu0 %v2099_v0 }
  0x41   :  { %1777 = vmatprep.subr.mxu1 %v2099_v0  ;;  %1765 = vmatpush3.msra.mxu0 %v2207_v12 }
  0x42   :  { %1778 = vmatpush3.msra.mxu1 %v2176_v8  ;;  %1766 = vmatprep.subr.mxu0 %v2099_v0 }
  0x43   :  { %1793 = vmatprep.subr.mxu1 %v2099_v0  ;;  %1767 = vmatpush3.msra.mxu0 %v2211_v13 }
  0x44   :  { %1782 = vmatprep.subr.mxu0 %v2099_v0 }
  0xac   :  { %v270_v26 = vpop.permute.xlu0 %269 }
  0xf7   :  { %v1748_v15 = vpop.f32.mrf.mxu0 }
  0xf8   :  { %v172_v16 = vadd.f32 %v1748_v15, %v1631_v14 }
  0xf9   :  { %v166_v17 = vpop.f32.mrf.mxu0 }
  0xfa   :  { %177 = vst.msk [vmem:[#allocation3 + $0x8] sm:$0xff] %vm175_vm4, %v172_v16  ;;  %v167_v18 = vadd.f32 %v1631_v14, %v166_v17 }
  0xfb   :  { %v258_v19 = vpop.f32.mrf.mxu1 }
  0xfc   :  { %176 = vst.msk [vmem:[#allocation3] sm:$0xff] %vm175_vm4, %v167_v18 }
  0xfd   :  { %v1759_v20 = vpop.f32.mrf.mxu1 }
 0x103   :  { %v187_v21 = vld [vmem:[#allocation3] sm:$0x3]  ;;  %v367_v42 = vld [vmem:[#allocation3 + $0x2] sm:$0x3]  ;;  %v545_v2 = vld [vmem:[#allocation3 + $0x4] sm:$0x3] }
 0x104   :  { %v262_v22 = vadd.f32 %v258_v19, %v187_v21 }
 0x106   :  { %v1635_v23 = vmul.f32 -1.442695, %v262_v22 }
 0x108   :  { %1937 = vpow2.f32 %v1635_v23 }
 0x115   :  { %v1938_v24 = vpop.eup %1937 }
 0x116   :  { %v266_v25 = vadd.f32 1.0, %v1938_v24 }
 0x118   :  { %1939 = vrcp.f32 %v266_v25 }
 0x125   :  { %v1940_v27 = vpop.eup %1939 }
 0x126   :  { %v272_v28 = vmul.f32 %v1940_v27, %v270_v26  ;;  %v356_v36 = vsub.f32 1.0, %v1940_v27  ;;  %v355_v38 = vmul.f32 %v1940_v27, %v2178_v9 }
 0x128   :  { %274 = vrot.lane.b32.xlu0 %v272_v28, %s2102_s2 }
 0x19a   :  { %v275_v29 = vpop.permute.xlu0 %274 }
 0x19b   :  { %1769 = vmatmul.mubr.msk.f32.vlgmr.msra.gmra.mxu0 %vm188_vm3, %v275_v29 }
 0x19c   :  { %1783 = vmatpush3.msra.mxu0 %v2201_v10  ;;  %1790 = vmatprep.mubr.msk.f32.mxu0 %vm2100_vm1, %v2099_v0 }
 0x19d   :  { %1784 = vmatprep.subr.mxu0 %v2099_v0 }
 0x19e   :  { %1785 = vmatpush3.msra.mxu0 %v2203_v11 }
 0x19f   :  { %1786 = vmatprep.subr.mxu0 %v2099_v0 }
 0x1a0   :  { %1787 = vmatpush3.msra.mxu0 %v2207_v12 }
 0x1a1   :  { %1788 = vmatprep.subr.mxu0 %v2099_v0 }
 0x1a2   :  { %1789 = vmatpush3.msra.mxu0 %v2211_v13 }
 0x1a3   :  { %1804 = vmatprep.subr.mxu0 %v2099_v0 }
 0x25b   :  { %v344_v30 = vpop.f32.mrf.mxu0 }
 0x25c   :  { %349 = vrot.lane.b32.xlu1 %v344_v30, %s2103_s14 }
 0x25d   :  { %v1770_v31 = vpop.f32.mrf.mxu0 }
 0x2ce   :  { %v350_v32 = vpop.permute.xlu1 %349 }
 0x2cf   :  { %v352_v33 = vadd.f32 %v350_v32, %v187_v21 }
 0x2d1   :  { %1941 = vtanh.f32 %v352_v33  ;;  %v723_v33 = vld [vmem:[#allocation3 + $0x6] sm:$0x3] }
 0x2de   :  { %v1942_v34 = vpop.eup %1941 }
 0x2df   :  { %v354_v35 = vmul.f32 0.8, %v1942_v34 }
 0x2e1   :  { %358 = vrot.lane.b32.xlu1 %v354_v35, %s2103_s14 }
 0x353   :  { %v359_v37 = vpop.permute.xlu1 %358 }
 0x354   :  { %v361_v39 = vmul.f32 %v359_v37, %v356_v36 }
 0x356   :  { %v362_v40 = vadd.f32 %v361_v39, %v355_v38 }
 0x358   :  { %364 = vst.msk [vmem:[#allocation2] sm:$0x3] %vm80_vm0, %v362_v40  ;;  %365 = vst.msk [vmem:[#allocation12] sm:$0x3] %vm80_vm0, %v362_v40 }
 0x35f   :  { %v366_v41 = vld [vmem:[#allocation2] sm:$0x3] }
 0x360   :  { %448 = vrot.lane.b32.xlu0 %v366_v41, %s2101_s3  ;;  %1780 = vmatmul.mubr.msk.f32.vlgmr.msra.gmra.mxu1 %vm188_vm3, %v366_v41 }
 0x361   :  { %1794 = vmatpush3.msra.mxu1 %v2165_v4  ;;  %1801 = vmatprep.mubr.msk.f32.mxu1 %vm2100_vm1, %v2099_v0 }
 0x362   :  { %1795 = vmatprep.subr.mxu1 %v2099_v0 }
 0x363   :  { %1796 = vmatpush3.msra.mxu1 %v2167_v5 }
 0x364   :  { %1797 = vmatprep.subr.mxu1 %v2099_v0 }
 0x365   :  { %1798 = vmatpush3.msra.mxu1 %v2171_v7 }
 0x366   :  { %1799 = vmatprep.subr.mxu1 %v2099_v0 }
 0x367   :  { %1800 = vmatpush3.msra.mxu1 %v2176_v8 }
 0x368   :  { %1815 = vmatprep.subr.mxu1 %v2099_v0 }
 0x3d2   :  { %v449_v50 = vpop.permute.xlu0 %448 }
 0x420   :  { %v437_v43 = vpop.f32.mrf.mxu1 }
 0x421   :  { %v441_v44 = vadd.f32 %v437_v43, %v367_v42 }
 0x422   :  { %v1781_v45 = vpop.f32.mrf.mxu1 }
 0x423   :  { %v1638_v46 = vmul.f32 -1.442695, %v441_v44 }
 0x425   :  { %1943 = vpow2.f32 %v1638_v46 }
 0x432   :  { %v1944_v47 = vpop.eup %1943 }
 0x433   :  { %v445_v48 = vadd.f32 1.0, %v1944_v47 }
 0x435   :  { %1945 = vrcp.f32 %v445_v48 }
 0x442   :  { %v1946_v49 = vpop.eup %1945 }
 0x443   :  { %v451_v51 = vmul.f32 %v1946_v49, %v449_v50  ;;  %v535_v59 = vsub.f32 1.0, %v1946_v49  ;;  %v534_v61 = vmul.f32 %v1946_v49, %v366_v41 }
 0x445   :  { %453 = vrot.lane.b32.xlu1 %v451_v51, %s2102_s2 }
 0x4b7   :  { %v454_v52 = vpop.permute.xlu1 %453 }
 0x4b8   :  { %1791 = vmatmul.mubr.msk.f32.vlgmr.msra.gmra.mxu0 %vm188_vm3, %v454_v52 }
 0x4b9   :  { %1805 = vmatpush3.msra.mxu0 %v2201_v10  ;;  %1812 = vmatprep.mubr.msk.f32.mxu0 %vm2100_vm1, %v2099_v0 }
 0x4ba   :  { %1806 = vmatprep.subr.mxu0 %v2099_v0 }
 0x4bb   :  { %1807 = vmatpush3.msra.mxu0 %v2203_v11 }
 0x4bc   :  { %1808 = vmatprep.subr.mxu0 %v2099_v0 }
 0x4bd   :  { %1809 = vmatpush3.msra.mxu0 %v2207_v12 }
 0x4be   :  { %1810 = vmatprep.subr.mxu0 %v2099_v0 }
 0x4bf   :  { %1811 = vmatpush3.msra.mxu0 %v2211_v13 }
 0x4c0   :  { %1826 = vmatprep.subr.mxu0 %v2099_v0 }
 0x578   :  { %v523_v53 = vpop.f32.mrf.mxu0 }
 0x579   :  { %528 = vrot.lane.b32.xlu0 %v523_v53, %s2103_s14 }
 0x57a   :  { %v1792_v54 = vpop.f32.mrf.mxu0 }
 0x5eb   :  { %v529_v55 = vpop.permute.xlu0 %528 }
 0x5ec   :  { %v531_v56 = vadd.f32 %v529_v55, %v367_v42 }
 0x5ee   :  { %1947 = vtanh.f32 %v531_v56  ;;  %v901_v56 = vld [vmem:[#allocation3 + $0x8] sm:$0x3] }
 0x5fb   :  { %v1948_v57 = vpop.eup %1947 }
 0x5fc   :  { %v533_v58 = vmul.f32 0.8, %v1948_v57 }
 0x5fe   :  { %537 = vrot.lane.b32.xlu1 %v533_v58, %s2103_s14 }
 0x670   :  { %v538_v60 = vpop.permute.xlu1 %537 }
 0x671   :  { %v540_v62 = vmul.f32 %v538_v60, %v535_v59 }
 0x673   :  { %v541_v63 = vadd.f32 %v540_v62, %v534_v61 }
 0x675   :  { %542 = vst.msk [vmem:[#allocation2] sm:$0x3] %vm80_vm0, %v541_v63  ;;  %543 = vst.msk [vmem:[#allocation12 + $0x2] sm:$0x3] %vm80_vm0, %v541_v63 }
 0x67c   :  { %v544_v1 = vld [vmem:[#allocation2] sm:$0x3] }
 0x67d   :  { %626 = vrot.lane.b32.xlu0 %v544_v1, %s2101_s3  ;;  %1802 = vmatmul.mubr.msk.f32.vlgmr.msra.gmra.mxu1 %vm188_vm3, %v544_v1 }
 0x67e   :  { %1816 = vmatpush3.msra.mxu1 %v2165_v4  ;;  %1823 = vmatprep.mubr.msk.f32.mxu1 %vm2100_vm1, %v2099_v0 }
 0x67f   :  { %1817 = vmatprep.subr.mxu1 %v2099_v0 }
 0x680   :  { %1818 = vmatpush3.msra.mxu1 %v2167_v5 }
 0x681   :  { %1819 = vmatprep.subr.mxu1 %v2099_v0 }
 0x682   :  { %1820 = vmatpush3.msra.mxu1 %v2171_v7 }
 0x683   :  { %1821 = vmatprep.subr.mxu1 %v2099_v0 }
 0x684   :  { %1822 = vmatpush3.msra.mxu1 %v2176_v8 }
 0x685   :  { %1837 = vmatprep.subr.mxu1 %v2099_v0 }
 0x6ef   :  { %v627_v18 = vpop.permute.xlu0 %626 }
 0x73d   :  { %v615_v3 = vpop.f32.mrf.mxu1 }
 0x73e   :  { %v619_v6 = vadd.f32 %v615_v3, %v545_v2 }
 0x73f   :  { %v1803_v9 = vpop.f32.mrf.mxu1 }
 0x740   :  { %v1641_v14 = vmul.f32 -1.442695, %v619_v6 }
 0x742   :  { %1949 = vpow2.f32 %v1641_v14 }
 0x74f   :  { %v1950_v15 = vpop.eup %1949 }
 0x750   :  { %v623_v16 = vadd.f32 1.0, %v1950_v15 }
 0x752   :  { %1951 = vrcp.f32 %v623_v16 }
 0x75f   :  { %v1952_v17 = vpop.eup %1951 }
 0x760   :  { %v629_v19 = vmul.f32 %v1952_v17, %v627_v18  ;;  %v713_v27 = vsub.f32 1.0, %v1952_v17  ;;  %v712_v29 = vmul.f32 %v1952_v17, %v544_v1 }
 0x762   :  { %631 = vrot.lane.b32.xlu1 %v629_v19, %s2102_s2 }
 0x7d4   :  { %v632_v20 = vpop.permute.xlu1 %631 }
 0x7d5   :  { %1813 = vmatmul.mubr.msk.f32.vlgmr.msra.gmra.mxu0 %vm188_vm3, %v632_v20 }
 0x7d6   :  { %1827 = vmatpush3.msra.mxu0 %v2201_v10  ;;  %1834 = vmatprep.mubr.msk.f32.mxu0 %vm2100_vm1, %v2099_v0 }
 0x7d7   :  { %1828 = vmatprep.subr.mxu0 %v2099_v0 }
 0x7d8   :  { %1829 = vmatpush3.msra.mxu0 %v2203_v11 }
 0x7d9   :  { %1830 = vmatprep.subr.mxu0 %v2099_v0 }
 0x7da   :  { %1831 = vmatpush3.msra.mxu0 %v2207_v12 }
 0x7db   :  { %1832 = vmatprep.subr.mxu0 %v2099_v0 }
 0x7dc   :  { %1833 = vmatpush3.msra.mxu0 %v2211_v13 }
 0x7dd   :  { %1848 = vmatprep.subr.mxu0 %v2099_v0 }
 0x895   :  { %v701_v21 = vpop.f32.mrf.mxu0 }
 0x896   :  { %706 = vrot.lane.b32.xlu0 %v701_v21, %s2103_s14 }
 0x897   :  { %v1814_v22 = vpop.f32.mrf.mxu0 }
 0x908   :  { %v707_v23 = vpop.permute.xlu0 %706 }
 0x909   :  { %v709_v24 = vadd.f32 %v707_v23, %v545_v2 }
 0x90b   :  { %1953 = vtanh.f32 %v709_v24  ;;  %v1079_v24 = vld [vmem:[#allocation3 + $0xa] sm:$0x3] }
 0x918   :  { %v1954_v25 = vpop.eup %1953 }
 0x919   :  { %v711_v26 = vmul.f32 0.8, %v1954_v25 }
 0x91b   :  { %715 = vrot.lane.b32.xlu1 %v711_v26, %s2103_s14 }
 0x98d   :  { %v716_v28 = vpop.permute.xlu1 %715 }
 0x98e   :  { %v718_v30 = vmul.f32 %v716_v28, %v713_v27 }
 0x990   :  { %v719_v31 = vadd.f32 %v718_v30, %v712_v29 }
 0x992   :  { %720 = vst.msk [vmem:[#allocation2] sm:$0x3] %vm80_vm0, %v719_v31  ;;  %721 = vst.msk [vmem:[#allocation12 + $0x4] sm:$0x3] %vm80_vm0, %v719_v31 }
 0x999   :  { %v722_v32 = vld [vmem:[#allocation2] sm:$0x3] }
 0x99a   :  { %804 = vrot.lane.b32.xlu0 %v722_v32, %s2101_s3  ;;  %1824 = vmatmul.mubr.msk.f32.vlgmr.msra.gmra.mxu1 %vm188_vm3, %v722_v32 }
 0x99b   :  { %1838 = vmatpush3.msra.mxu1 %v2165_v4  ;;  %1845 = vmatprep.mubr.msk.f32.mxu1 %vm2100_vm1, %v2099_v0 }
 0x99c   :  { %1839 = vmatprep.subr.mxu1 %v2099_v0 }
 0x99d   :  { %1840 = vmatpush3.msra.mxu1 %v2167_v5 }
 0x99e   :  { %1841 = vmatprep.subr.mxu1 %v2099_v0 }
 0x99f   :  { %1842 = vmatpush3.msra.mxu1 %v2171_v7 }
 0x9a0   :  { %1843 = vmatprep.subr.mxu1 %v2099_v0 }
 0x9a1   :  { %1844 = vmatpush3.msra.mxu1 %v2176_v8 }
 0x9a2   :  { %1859 = vmatprep.subr.mxu1 %v2099_v0 }
 0xa0c   :  { %v805_v41 = vpop.permute.xlu0 %804 }
 0xa5a   :  { %v793_v34 = vpop.f32.mrf.mxu1 }
 0xa5b   :  { %v797_v35 = vadd.f32 %v793_v34, %v723_v33 }
 0xa5c   :  { %v1825_v36 = vpop.f32.mrf.mxu1 }
 0xa5d   :  { %v1644_v37 = vmul.f32 -1.442695, %v797_v35 }
 0xa5f   :  { %1955 = vpow2.f32 %v1644_v37 }
 0xa6c   :  { %v1956_v38 = vpop.eup %1955 }
 0xa6d   :  { %v801_v39 = vadd.f32 1.0, %v1956_v38 }
 0xa6f   :  { %1957 = vrcp.f32 %v801_v39 }
 0xa7c   :  { %v1958_v40 = vpop.eup %1957 }
 0xa7d   :  { %v807_v42 = vmul.f32 %v1958_v40, %v805_v41  ;;  %v891_v50 = vsub.f32 1.0, %v1958_v40  ;;  %v890_v52 = vmul.f32 %v1958_v40, %v722_v32 }
 0xa7f   :  { %809 = vrot.lane.b32.xlu1 %v807_v42, %s2102_s2 }
 0xaf1   :  { %v810_v43 = vpop.permute.xlu1 %809 }
 0xaf2   :  { %1835 = vmatmul.mubr.msk.f32.vlgmr.msra.gmra.mxu0 %vm188_vm3, %v810_v43 }
 0xaf3   :  { %1849 = vmatpush3.msra.mxu0 %v2201_v10  ;;  %1856 = vmatprep.mubr.msk.f32.mxu0 %vm2100_vm1, %v2099_v0 }
 0xaf4   :  { %1850 = vmatprep.subr.mxu0 %v2099_v0 }
 0xaf5   :  { %1851 = vmatpush3.msra.mxu0 %v2203_v11 }
 0xaf6   :  { %1852 = vmatprep.subr.mxu0 %v2099_v0 }
 0xaf7   :  { %1853 = vmatpush3.msra.mxu0 %v2207_v12 }
 0xaf8   :  { %1854 = vmatprep.subr.mxu0 %v2099_v0 }
 0xaf9   :  { %1855 = vmatpush3.msra.mxu0 %v2211_v13 }
 0xafa   :  { %1870 = vmatprep.subr.mxu0 %v2099_v0 }
 0xbb2   :  { %v879_v44 = vpop.f32.mrf.mxu0 }
 0xbb3   :  { %884 = vrot.lane.b32.xlu0 %v879_v44, %s2103_s14 }
 0xbb4   :  { %v1836_v45 = vpop.f32.mrf.mxu0 }
 0xc25   :  { %v885_v46 = vpop.permute.xlu0 %884 }
 0xc26   :  { %v887_v47 = vadd.f32 %v885_v46, %v723_v33 }
 0xc28   :  { %1959 = vtanh.f32 %v887_v47  ;;  %v1257_v47 = vld [vmem:[#allocation3 + $0xc] sm:$0x3] }
 0xc35   :  { %v1960_v48 = vpop.eup %1959 }
 0xc36   :  { %v889_v49 = vmul.f32 0.8, %v1960_v48 }
 0xc38   :  { %893 = vrot.lane.b32.xlu1 %v889_v49, %s2103_s14 }
 0xcaa   :  { %v894_v51 = vpop.permute.xlu1 %893 }
 0xcab   :  { %v896_v53 = vmul.f32 %v894_v51, %v891_v50 }
 0xcad   :  { %v897_v54 = vadd.f32 %v896_v53, %v890_v52 }
 0xcaf   :  { %898 = vst.msk [vmem:[#allocation2] sm:$0x3] %vm80_vm0, %v897_v54  ;;  %899 = vst.msk [vmem:[#allocation12 + $0x6] sm:$0x3] %vm80_vm0, %v897_v54 }
 0xcb6   :  { %v900_v55 = vld [vmem:[#allocation2] sm:$0x3] }
 0xcb7   :  { %982 = vrot.lane.b32.xlu0 %v900_v55, %s2101_s3  ;;  %1846 = vmatmul.mubr.msk.f32.vlgmr.msra.gmra.mxu1 %vm188_vm3, %v900_v55 }
 0xcb8   :  { %1860 = vmatpush3.msra.mxu1 %v2165_v4  ;;  %1867 = vmatprep.mubr.msk.f32.mxu1 %vm2100_vm1, %v2099_v0 }
 0xcb9   :  { %1861 = vmatprep.subr.mxu1 %v2099_v0 }
 0xcba   :  { %1862 = vmatpush3.msra.mxu1 %v2167_v5 }
 0xcbb   :  { %1863 = vmatprep.subr.mxu1 %v2099_v0 }
 0xcbc   :  { %1864 = vmatpush3.msra.mxu1 %v2171_v7 }
 0xcbd   :  { %1865 = vmatprep.subr.mxu1 %v2099_v0 }
 0xcbe   :  { %1866 = vmatpush3.msra.mxu1 %v2176_v8 }
 0xcbf   :  { %1881 = vmatprep.subr.mxu1 %v2099_v0 }
 0xd29   :  { %v983_v1 = vpop.permute.xlu0 %982 }
 0xd77   :  { %v971_v57 = vpop.f32.mrf.mxu1 }
 0xd78   :  { %v975_v58 = vadd.f32 %v971_v57, %v901_v56 }
 0xd79   :  { %v1847_v59 = vpop.f32.mrf.mxu1 }
 0xd7a   :  { %v1647_v60 = vmul.f32 -1.442695, %v975_v58 }
 0xd7c   :  { %1961 = vpow2.f32 %v1647_v60 }
 0xd89   :  { %v1962_v61 = vpop.eup %1961 }
 0xd8a   :  { %v979_v62 = vadd.f32 1.0, %v1962_v61 }
 0xd8c   :  { %1963 = vrcp.f32 %v979_v62 }
 0xd99   :  { %v1964_v63 = vpop.eup %1963 }
 0xd9a   :  { %v985_v2 = vmul.f32 %v1964_v63, %v983_v1  ;;  %v1069_v18 = vsub.f32 1.0, %v1964_v63  ;;  %v1068_v20 = vmul.f32 %v1964_v63, %v900_v55 }
 0xd9c   :  { %987 = vrot.lane.b32.xlu1 %v985_v2, %s2102_s2 }
 0xe0e   :  { %v988_v3 = vpop.permute.xlu1 %987 }
 0xe0f   :  { %1857 = vmatmul.mubr.msk.f32.vlgmr.msra.gmra.mxu0 %vm188_vm3, %v988_v3 }
 0xe10   :  { %1871 = vmatpush3.msra.mxu0 %v2201_v10  ;;  %1878 = vmatprep.mubr.msk.f32.mxu0 %vm2100_vm1, %v2099_v0 }
 0xe11   :  { %1872 = vmatprep.subr.mxu0 %v2099_v0 }
 0xe12   :  { %1873 = vmatpush3.msra.mxu0 %v2203_v11 }
 0xe13   :  { %1874 = vmatprep.subr.mxu0 %v2099_v0 }
 0xe14   :  { %1875 = vmatpush3.msra.mxu0 %v2207_v12 }
 0xe15   :  { %1876 = vmatprep.subr.mxu0 %v2099_v0 }
 0xe16   :  { %1877 = vmatpush3.msra.mxu0 %v2211_v13 }
 0xe17   :  { %1892 = vmatprep.subr.mxu0 %v2099_v0 }
 0xecf   :  { %v1057_v6 = vpop.f32.mrf.mxu0 }
 0xed0   :  { %1062 = vrot.lane.b32.xlu0 %v1057_v6, %s2103_s14 }
 0xed1   :  { %v1858_v9 = vpop.f32.mrf.mxu0 }
 0xf42   :  { %v1063_v14 = vpop.permute.xlu0 %1062 }
 0xf43   :  { %v1065_v15 = vadd.f32 %v1063_v14, %v901_v56 }
 0xf45   :  { %1965 = vtanh.f32 %v1065_v15 }
 0xf52   :  { %v1966_v16 = vpop.eup %1965 }
 0xf53   :  { %v1067_v17 = vmul.f32 0.8, %v1966_v16 }
 0xf55   :  { %1071 = vrot.lane.b32.xlu1 %v1067_v17, %s2103_s14 }
 0xfc7   :  { %v1072_v19 = vpop.permute.xlu1 %1071 }
 0xfc8   :  { %v1074_v21 = vmul.f32 %v1072_v19, %v1069_v18 }
 0xfca   :  { %v1075_v22 = vadd.f32 %v1074_v21, %v1068_v20 }
 0xfcc   :  { %1077 = vst.msk [vmem:[#allocation12 + $0x8] sm:$0x3] %vm80_vm0, %v1075_v22  ;;  %1076 = vst.msk [vmem:[#allocation2] sm:$0x3] %vm80_vm0, %v1075_v22 }
 0xfd3   :  { %v1078_v23 = vld [vmem:[#allocation2] sm:$0x3] }
 0xfd4   :  { %1160 = vrot.lane.b32.xlu0 %v1078_v23, %s2101_s3  ;;  %1868 = vmatmul.mubr.msk.f32.vlgmr.msra.gmra.mxu1 %vm188_vm3, %v1078_v23 }
 0xfd5   :  { %1882 = vmatpush3.msra.mxu1 %v2165_v4  ;;  %1889 = vmatprep.mubr.msk.f32.mxu1 %vm2100_vm1, %v2099_v0 }
 0xfd6   :  { %1883 = vmatprep.subr.mxu1 %v2099_v0 }
 0xfd7   :  { %1884 = vmatpush3.msra.mxu1 %v2167_v5 }
 0xfd8   :  { %1885 = vmatprep.subr.mxu1 %v2099_v0 }
 0xfd9   :  { %1886 = vmatpush3.msra.mxu1 %v2171_v7 }
 0xfda   :  { %1887 = vmatprep.subr.mxu1 %v2099_v0 }
 0xfdb   :  { %1888 = vmatpush3.msra.mxu1 %v2176_v8 }
 0xfdc   :  { %1903 = vmatprep.subr.mxu1 %v2099_v0 }
0x1046   :  { %v1161_v32 = vpop.permute.xlu0 %1160 }
0x1094   :  { %v1149_v25 = vpop.f32.mrf.mxu1 }
0x1095   :  { %v1153_v26 = vadd.f32 %v1149_v25, %v1079_v24 }
0x1096   :  { %v1869_v27 = vpop.f32.mrf.mxu1 }
0x1097   :  { %v1650_v28 = vmul.f32 -1.442695, %v1153_v26 }
0x1099   :  { %1967 = vpow2.f32 %v1650_v28 }
0x10a6   :  { %v1968_v29 = vpop.eup %1967 }
0x10a7   :  { %v1157_v30 = vadd.f32 1.0, %v1968_v29 }
0x10a9   :  { %1969 = vrcp.f32 %v1157_v30 }
0x10b6   :  { %v1970_v31 = vpop.eup %1969 }
0x10b7   :  { %v1163_v33 = vmul.f32 %v1970_v31, %v1161_v32  ;;  %v1247_v41 = vsub.f32 1.0, %v1970_v31  ;;  %v1246_v43 = vmul.f32 %v1970_v31, %v1078_v23 }
0x10b9   :  { %1165 = vrot.lane.b32.xlu1 %v1163_v33, %s2102_s2 }
0x112b   :  { %v1166_v34 = vpop.permute.xlu1 %1165 }
0x112c   :  { %1879 = vmatmul.mubr.msk.f32.vlgmr.msra.gmra.mxu0 %vm188_vm3, %v1166_v34 }
0x112d   :  { %1893 = vmatpush3.msra.mxu0 %v2201_v10  ;;  %1900 = vmatprep.mubr.msk.f32.mxu0 %vm2100_vm1, %v2099_v0 }
0x112e   :  { %1894 = vmatprep.subr.mxu0 %v2099_v0 }
0x112f   :  { %1895 = vmatpush3.msra.mxu0 %v2203_v11 }
0x1130   :  { %1896 = vmatprep.subr.mxu0 %v2099_v0 }
0x1131   :  { %1897 = vmatpush3.msra.mxu0 %v2207_v12 }
0x1132   :  { %1898 = vmatprep.subr.mxu0 %v2099_v0 }
0x1133   :  { %1899 = vmatpush3.msra.mxu0 %v2211_v13 }
0x1134   :  { %1914 = vmatprep.subr.mxu0 %v2099_v0 }
0x11ec   :  { %v1235_v35 = vpop.f32.mrf.mxu0 }
0x11ed   :  { %1240 = vrot.lane.b32.xlu0 %v1235_v35, %s2103_s14 }
0x11ee   :  { %v1880_v36 = vpop.f32.mrf.mxu0 }
0x125f   :  { %v1241_v37 = vpop.permute.xlu0 %1240 }
0x1260   :  { %v1243_v38 = vadd.f32 %v1241_v37, %v1079_v24 }
0x1262   :  { %1971 = vtanh.f32 %v1243_v38 }
0x126f   :  { %v1972_v39 = vpop.eup %1971 }
0x1270   :  { %v1245_v40 = vmul.f32 0.8, %v1972_v39 }
0x1272   :  { %1249 = vrot.lane.b32.xlu1 %v1245_v40, %s2103_s14 }
0x12e4   :  { %v1250_v42 = vpop.permute.xlu1 %1249 }
0x12e5   :  { %v1252_v44 = vmul.f32 %v1250_v42, %v1247_v41 }
0x12e7   :  { %v1253_v45 = vadd.f32 %v1252_v44, %v1246_v43 }
0x12e9   :  { %1255 = vst.msk [vmem:[#allocation12 + $0xa] sm:$0x3] %vm80_vm0, %v1253_v45  ;;  %1254 = vst.msk [vmem:[#allocation2] sm:$0x3] %vm80_vm0, %v1253_v45 }
0x12f0   :  { %v1256_v46 = vld [vmem:[#allocation2] sm:$0x3] }
0x12f1   :  { %1338 = vrot.lane.b32.xlu0 %v1256_v46, %s2101_s3  ;;  %1890 = vmatmul.mubr.msk.f32.vlgmr.msra.gmra.mxu1 %vm188_vm3, %v1256_v46 }
0x12f2   :  { %1904 = vmatpush3.msra.mxu1 %v2165_v4  ;;  %1911 = vmatprep.mubr.msk.f32.mxu1 %vm2100_vm1, %v2099_v0 }
0x12f3   :  { %1905 = vmatprep.subr.mxu1 %v2099_v0 }
0x12f4   :  { %1906 = vmatpush3.msra.mxu1 %v2167_v5 }
0x12f5   :  { %1907 = vmatprep.subr.mxu1 %v2099_v0 }
0x12f6   :  { %1908 = vmatpush3.msra.mxu1 %v2171_v7 }
0x12f7   :  { %1909 = vmatprep.subr.mxu1 %v2099_v0 }
0x12f8   :  { %1910 = vmatpush3.msra.mxu1 %v2176_v8 }
0x1363   :  { %v1339_v54 = vpop.permute.xlu0 %1338 }
0x13b1   :  { %v1327_v48 = vpop.f32.mrf.mxu1 }
0x13b2   :  { %v1331_v49 = vadd.f32 %v1327_v48, %v1257_v47 }
0x13b3   :  { %v1891_v50 = vpop.f32.mrf.mxu1 }
0x13b4   :  { %v1653_v4 = vmul.f32 -1.442695, %v1331_v49 }
0x13b6   :  { %1973 = vpow2.f32 %v1653_v4 }
0x13c3   :  { %v1974_v51 = vpop.eup %1973 }
0x13c4   :  { %v1335_v52 = vadd.f32 1.0, %v1974_v51 }
0x13c6   :  { %1975 = vrcp.f32 %v1335_v52 }
0x13d3   :  { %v1976_v53 = vpop.eup %1975 }
0x13d4   :  { %v1341_v5 = vmul.f32 %v1976_v53, %v1339_v54  ;;  %v1424_v60 = vmul.f32 %v1976_v53, %v1256_v46 }
0x13d6   :  { %1343 = vrot.lane.b32.xlu1 %v1341_v5, %s2102_s2 }
0x1448   :  { %v1344_v55 = vpop.permute.xlu1 %1343 }
0x1449   :  { %1901 = vmatmul.mubr.msk.f32.vlgmr.msra.gmra.mxu0 %vm188_vm3, %v1344_v55 }
0x144a   :  { %1915 = vmatpush3.msra.mxu0 %v2201_v10  ;;  %1922 = vmatprep.mubr.msk.f32.mxu0 %vm2100_vm1, %v2099_v0 }
0x144b   :  { %1916 = vmatprep.subr.mxu0 %v2099_v0 }
0x144c   :  { %1917 = vmatpush3.msra.mxu0 %v2203_v11  ;;  %v1425_v11 = vsub.f32 1.0, %v1976_v53 }
0x144d   :  { %1918 = vmatprep.subr.mxu0 %v2099_v0 }
0x144e   :  { %1919 = vmatpush3.msra.mxu0 %v2207_v12 }
0x144f   :  { %1920 = vmatprep.subr.mxu0 %v2099_v0 }
0x1450   :  { %1921 = vmatpush3.msra.mxu0 %v2211_v13  ;;  %v1435_v13 = vld [vmem:[#allocation3 + $0xe] sm:$0x3] }
0x1509   :  { %v1413_v7 = vpop.f32.mrf.mxu0 }
0x150a   :  { %1418 = vrot.lane.b32.xlu0 %v1413_v7, %s2103_s14 }
0x150b   :  { %v1902_v8 = vpop.f32.mrf.mxu0 }
0x157c   :  { %v1419_v10 = vpop.permute.xlu0 %1418 }
0x157d   :  { %v1421_v56 = vadd.f32 %v1419_v10, %v1257_v47 }
0x157f   :  { %1977 = vtanh.f32 %v1421_v56 }
0x158c   :  { %v1978_v57 = vpop.eup %1977 }
0x158d   :  { %v1423_v58 = vmul.f32 0.8, %v1978_v57 }
0x158f   :  { %1427 = vrot.lane.b32.xlu1 %v1423_v58, %s2103_s14 }
0x1601   :  { %v1428_v59 = vpop.permute.xlu1 %1427 }
0x1602   :  { %v1430_v61 = vmul.f32 %v1428_v59, %v1425_v11 }
0x1604   :  { %v1431_v12 = vadd.f32 %v1430_v61, %v1424_v60 }
0x1606   :  { %1433 = vst.msk [vmem:[#allocation12 + $0xc] sm:$0x3] %vm80_vm0, %v1431_v12  ;;  %1432 = vst.msk [vmem:[#allocation2] sm:$0x3] %vm80_vm0, %v1431_v12 }
0x160d   :  { %v1434_v0 = vld [vmem:[#allocation2] sm:$0x3] }
0x160e   :  { %1516 = vrot.lane.b32.xlu0 %v1434_v0, %s2101_s3  ;;  %1912 = vmatmul.mubr.msk.f32.vlgmr.msra.gmra.mxu1 %vm188_vm3, %v1434_v0 }
0x1680   :  { %v1517_v14 = vpop.permute.xlu0 %1516 }
0x16ce   :  { %v1505_v62 = vpop.f32.mrf.mxu1 }
0x16cf   :  { %v1509_v63 = vadd.f32 %v1505_v62, %v1435_v13 }
0x16d0   :  { %v1913_v1 = vpop.f32.mrf.mxu1 }
0x16d1   :  { %v1656_v2 = vmul.f32 -1.442695, %v1509_v63 }
0x16d3   :  { %1979 = vpow2.f32 %v1656_v2 }
0x16e0   :  { %v1980_v3 = vpop.eup %1979 }
0x16e1   :  { %v1513_v6 = vadd.f32 1.0, %v1980_v3 }
0x16e3   :  { %1981 = vrcp.f32 %v1513_v6 }
0x16f0   :  { %v1982_v9 = vpop.eup %1981 }
0x16f1   :  { %v1519_v15 = vmul.f32 %v1982_v9, %v1517_v14  ;;  %v1603_v23 = vsub.f32 1.0, %v1982_v9  ;;  %v1602_v25 = vmul.f32 %v1982_v9, %v1434_v0 }
0x16f3   :  { %1521 = vrot.lane.b32.xlu1 %v1519_v15, %s2102_s2 }
0x1765   :  { %v1522_v16 = vpop.permute.xlu1 %1521 }
0x1766   :  { %1923 = vmatmul.mubr.msk.f32.vlgmr.msra.gmra.mxu0 %vm188_vm3, %v1522_v16 }
0x1826   :  { %v1591_v17 = vpop.f32.mrf.mxu0 }
0x1827   :  { %1596 = vrot.lane.b32.xlu0 %v1591_v17, %s2103_s14 }
0x1828   :  { %v1924_v18 = vpop.f32.mrf.mxu0 }
0x1899   :  { %v1597_v19 = vpop.permute.xlu0 %1596 }
0x189a   :  { %v1599_v20 = vadd.f32 %v1597_v19, %v1435_v13 }
0x189c   :  { %1983 = vtanh.f32 %v1599_v20 }
0x18a9   :  { %v1984_v21 = vpop.eup %1983 }
0x18aa   :  { %v1601_v22 = vmul.f32 0.8, %v1984_v21 }
0x18ac   :  { %1605 = vrot.lane.b32.xlu1 %v1601_v22, %s2103_s14 }
0x191e   :  { %v1606_v24 = vpop.permute.xlu1 %1605 }
0x191f   :  { %v1608_v26 = vmul.f32 %v1606_v24, %v1603_v23 }
0x1921   :  { %v1609_v27 = vadd.f32 %v1608_v26, %v1602_v25 }
0x1923   :  { %1610 = vst.msk [vmem:[#allocation2] sm:$0x3] %vm80_vm0, %v1609_v27  ;;  %1611 = vst.msk [vmem:[#allocation12 + $0xe] sm:$0x3] %vm80_vm0, %v1609_v27 }
0x1924   :  { %2076 = shalt.err (!%p2073_p10)
}
0x1925   :  { %1623 = dma.vmem_to_hbm [thread:$0]  %s1618_s16, 256, %s2422_s5, [#allocation6], %s2095_s23, %s2095_s23, %s2096_s24  }
0x1926   :  { %2091 = dma.done.wait [#allocation6], 256  }
0x1927   :  { %2092 = vsyncadd [#allocation6], 4294967040 }
0x1928   :  { %1627 = vsyncpa [#allocation5], 1 }
0x1929   :  { %1628 = vsyncpa [#allocation8], 1 }
0x192a   :  { %1629 = vsyncpa [#allocation11], 1 }
0x192b   :  { %1630 = vsyncpa [#allocation6], 1 }

</bundles_post_ra>
